<compile_context>
chip_gen: v5e
topology: v5e:2x2
jax: 0.10.0
libtpu: 0.0.40
codegen_flags: <defaults>
</compile_context>

<pallas_src>
import math

import jax
import jax.numpy as jnp
from jax import lax
from jax.experimental import pallas as pl
from jax.experimental.pallas import tpu as pltpu


_INV_SQRT2 = 1.0 / math.sqrt(2.0)


def _round_up(n, m):
    return ((n + m - 1) // m) * m


def _crnn_cell_kernel(xcat_ref, x_ref, wcat_ref, wadj_ref, bh_ref, out_ref):
    # One fused matmul for x@W_xh + h@W_hh + c@W_ch (K = Kp), bf16 on the
    # MXU with f32 accumulation.
    pre = jnp.dot(xcat_ref[...], wcat_ref[...],
                  preferred_element_type=jnp.float32)
    # Small second dot for the input-adjust residual (K = I).
    adj = jnp.dot(x_ref[...], wadj_ref[...],
                  preferred_element_type=jnp.float32)

    pre = pre + bh_ref[...]                      # (1, TN) bias broadcasts

    # Exact GELU (PyTorch F.gelu default): 0.5 * x * (1 + erf(x / sqrt(2)))
    gelu = 0.5 * pre * (1.0 + lax.erf(pre * _INV_SQRT2))

    out_ref[...] = (gelu + adj).astype(out_ref.dtype)


def prepare_params(params, compute_dtype=jnp.bfloat16):
    """One-time (out of hot path) weight preparation:
      * concatenate W_xh/W_hh/W_ch along the contraction dim,
      * transpose adjust_input.weight to [in, out],
      * pad hidden (output) dim to a multiple of 128 (lane-dense stores),
      * pad the fused contraction dim K = I+H+C to a multiple of 128,
      * cast matmul weights to bf16 (MXU native), keep bias in f32.
    """
    W_xh = params["W_xh"]                       # [I, H]
    W_hh = params["W_hh"]                       # [H, H]
    W_ch = params["W_ch"]                       # [C, H]
    I, H = W_xh.shape
    C = W_ch.shape[0]
    K = I + H + C
    Hp = _round_up(H, 128)
    Kp = _round_up(K, 128)

    W_cat = jnp.concatenate([W_xh, W_hh, W_ch], axis=0)              # [K, H]
    W_cat = jnp.pad(W_cat, ((0, Kp - K), (0, Hp - H))).astype(compute_dtype)

    W_adj = params["adjust_input_weight"].T                          # [I, H]
    W_adj = jnp.pad(W_adj, ((0, 0), (0, Hp - H))).astype(compute_dtype)

    b_h = params["b_h"].reshape(1, -1).astype(jnp.float32)
    b_h = jnp.pad(b_h, ((0, 0), (0, Hp - H)))                        # [1, Hp]

    return {"W_cat": W_cat, "W_adj": W_adj, "b_h": b_h}


def constrained_rnn_cell(x, c, h, prepared):
    """Pallas-backed forward of ConstrainedRNNCell.

    x: [B, input_size], c: [B, (1,) constraint_size], h: [B, hidden_size]
    prepared: output of prepare_params().
    Returns [B, hidden_size] float32.
    """
    B = x.shape[0]
    H = h.shape[1]
    W_cat = prepared["W_cat"]
    W_adj = prepared["W_adj"]
    b_h = prepared["b_h"]
    Kp, Hp = W_cat.shape
    I = W_adj.shape[0]
    cdt = W_cat.dtype

    # PyTorch does c.float().squeeze(); reshape to (B, C) so constraint_size
    # == 1 cannot end up transposed.
    c2 = c.astype(jnp.float32).reshape(B, -1)
    C = c2.shape[1]
    K = I + H + C

    # Fused activation operand [x | h | c | 0-pad] for the single big dot
    # (single XLA fusion; the zero pad keeps the lane dim at Kp).
    parts = [x.astype(cdt), h.astype(cdt), c2.astype(cdt)]
    if Kp > K:
        parts.append(jnp.zeros((B, Kp - K), cdt))
    xcat = jnp.concatenate(parts, axis=1)                         # (B, Kp)
    xb = x.astype(cdt)                                            # (B, I)

    # Batch tiling (sublane-friendly: multiple of 16 for bf16 packing).
    TB = min(128, _round_up(B, 16))
    Bp = _round_up(B, TB)
    if Bp != B:
        xcat = jnp.pad(xcat, ((0, Bp - B), (0, 0)))
        xb = jnp.pad(xb, ((0, Bp - B), (0, 0)))

    # Hidden tiling: lane-dense (multiple of 128), dividing padded hidden.
    TN = 512 if Hp % 512 == 0 else (256 if Hp % 256 == 0 else 128)
    grid = (Bp // TB, Hp // TN)

    cost = pl.CostEstimate(
        flops=2 * Bp * Hp * (Kp + I),
        transcendentals=Bp * Hp,
        bytes_accessed=2 * (Bp * Kp + Bp * I + Kp * Hp + I * Hp)
        + 4 * (Hp + Bp * Hp),
    )

    out_padded = pl.pallas_call(
        _crnn_cell_kernel,
        out_shape=jax.ShapeDtypeStruct((Bp, Hp), jnp.float32),
        grid=grid,
        in_specs=[
            pl.BlockSpec((TB, Kp), lambda i, j: (i, 0)),   # [x | h | c]
            pl.BlockSpec((TB, I), lambda i, j: (i, 0)),    # x (adjust path)
            pl.BlockSpec((Kp, TN), lambda i, j: (0, j)),   # W_cat
            pl.BlockSpec((I, TN), lambda i, j: (0, j)),    # W_adj
            pl.BlockSpec((1, TN), lambda i, j: (0, j)),    # b_h
        ],
        out_specs=pl.BlockSpec((TB, TN), lambda i, j: (i, j)),
        compiler_params=pltpu.CompilerParams(
            dimension_semantics=("parallel", "parallel"),
            vmem_limit_bytes=32 * 1024 * 1024,
        ),
        cost_estimate=cost,
    )(xcat, xb, W_cat, W_adj, b_h)

    return out_padded[:B, :H]


def init_params(key, input_size, constraint_size, hidden_size):
    """Mirrors ConstrainedRNNCell.init_params(): every parameter
    ~ Normal(mean=-stdv, std=stdv), stdv = 1/sqrt(hidden_size)."""
    stdv = 1.0 / math.sqrt(hidden_size)
    ks = jax.random.split(key, 5)

    def nrm(k, shape):
        return (-stdv + stdv * jax.random.normal(k, shape)).astype(jnp.float32)

    return {
        "W_xh": nrm(ks[0], (input_size, hidden_size)),
        "W_hh": nrm(ks[1], (hidden_size, hidden_size)),
        "W_ch": nrm(ks[2], (constraint_size, hidden_size)),
        "b_h": nrm(ks[3], (hidden_size,)),
        # nn.Linear(input_size, hidden_size, bias=False).weight: [H, I]
        "adjust_input_weight": nrm(ks[4], (hidden_size, input_size)),
    }


def _reference_f32(x, c, h, params):
    """Pure-JAX full-f32 reference (exact PyTorch semantics)."""
    B = x.shape[0]
    c2 = c.astype(jnp.float32).reshape(B, -1)
    pre = (x @ params["W_xh"] + h @ params["W_hh"] + c2 @ params["W_ch"]
           + params["b_h"])
    hn = jax.nn.gelu(pre, approximate=False)
    return hn + x @ params["adjust_input_weight"].T


def _reference_bf16(x, c, h, params):
    """Reference with the same bf16-operand / f32-accumulate matmul precision
    as the kernel (tight-tolerance check of the kernel's structure)."""
    B = x.shape[0]
    bf = jnp.bfloat16
    c2 = c.astype(jnp.float32).reshape(B, -1).astype(bf)
    xcat = jnp.concatenate([x.astype(bf), h.astype(bf), c2], axis=1)
    W_cat = jnp.concatenate(
        [params["W_xh"], params["W_hh"], params["W_ch"]], axis=0).astype(bf)
    pre = jnp.dot(xcat, W_cat, preferred_element_type=jnp.float32) + params["b_h"]
    hn = jax.nn.gelu(pre, approximate=False)
    adj = jnp.dot(x.astype(bf), params["adjust_input_weight"].T.astype(bf),
                  preferred_element_type=jnp.float32)
    return hn + adj


if __name__ == "__main__":
    key = jax.random.PRNGKey(0)
    fwd = jax.jit(constrained_rnn_cell)

    # --- Case 1: baseline small shapes (with a squeezable singleton dim in c)
    B, I, C, H = 8, 16, 8, 32
    k_param, k_x, k_c, k_h = jax.random.split(key, 4)
    params = init_params(k_param, I, C, H)
    prepared = prepare_params(params)
    x = jax.random.normal(k_x, (B, I), dtype=jnp.float32)
    c = jax.random.normal(k_c, (B, 1, C), dtype=jnp.float32)
    h = jax.random.normal(k_h, (B, H), dtype=jnp.float32)

    out = fwd(x, c, h, prepared)
    jax.block_until_ready(out)
    assert out.shape == (B, H)
    ref_bf = _reference_bf16(x, c, h, params)
    ref_32 = _reference_f32(x, c, h, params)
    assert jnp.allclose(out, ref_bf, atol=5e-3, rtol=5e-3), "mismatch vs bf16 ref"
    assert jnp.allclose(out, ref_32, atol=5e-2, rtol=5e-2), "mismatch vs f32 ref"

    # --- Case 2: constraint_size == 1 edge case (the squeeze() hazard)
    params1 = init_params(k_param, I, 1, H)
    prepared1 = prepare_params(params1)
    c1 = jax.random.normal(k_c, (B, 1), dtype=jnp.float32)
    out1 = fwd(x, c1, h, prepared1)
    jax.block_until_ready(out1)
    ref1 = _reference_f32(x, c1, h, params1)
    assert out1.shape == (B, H)
    assert jnp.allclose(out1, ref1, atol=5e-2, rtol=5e-2), "mismatch (C==1)"

    # --- Case 3: awkward non-aligned sizes (exercises K / H / batch padding)
    B3, I3, C3, H3 = 10, 7, 3, 100
    kp3, kx3, kc3, kh3 = jax.random.split(jax.random.PRNGKey(1), 4)
    params3 = init_params(kp3, I3, C3, H3)
    prepared3 = prepare_params(params3)
    x3 = jax.random.normal(kx3, (B3, I3), dtype=jnp.float32)
    c3 = jax.random.normal(kc3, (B3, C3), dtype=jnp.float32)
    h3 = jax.random.normal(kh3, (B3, H3), dtype=jnp.float32)
    out3 = fwd(x3, c3, h3, prepared3)
    jax.block_until_ready(out3)
    assert out3.shape == (B3, H3)
    ref3_bf = _reference_bf16(x3, c3, h3, params3)
    ref3_32 = _reference_f32(x3, c3, h3, params3)
    assert jnp.allclose(out3, ref3_bf, atol=5e-3, rtol=5e-3), "mismatch (odd) bf16"
    assert jnp.allclose(out3, ref3_32, atol=5e-2, rtol=5e-2), "mismatch (odd) f32"

    print("KERNEL_OK")
</pallas_src>

<mosaic_0001>
module attributes {stable_mosaic.version = 11 : i64} {
  func.func @_crnn_cell_kernel(%arg0: i32, %arg1: i32, %arg2: memref<16x128xbf16, #tpu.memory_space<vmem>>, %arg3: memref<16x16xbf16, #tpu.memory_space<vmem>>, %arg4: memref<128x128xbf16, #tpu.memory_space<vmem>>, %arg5: memref<16x128xbf16, #tpu.memory_space<vmem>>, %arg6: memref<1x128xf32, #tpu.memory_space<vmem>>, %arg7: memref<16x128xf32, #tpu.memory_space<vmem>>) attributes {dimension_semantics = [#tpu.dimension_semantics<parallel>, #tpu.dimension_semantics<parallel>], iteration_bounds = array<i64: 1, 1>, scalar_prefetch = 0 : i64, scratch_operands = 0 : i64, tpu.core_type = #tpu.core_type<tc>, window_params = [{transform_indices = @transform_0, window_bounds = array<i64: 16, 128>}, {transform_indices = @transform_1, window_bounds = array<i64: 16, 16>}, {transform_indices = @transform_2, window_bounds = array<i64: 128, 128>}, {transform_indices = @transform_3, window_bounds = array<i64: 16, 128>}, {transform_indices = @transform_4, window_bounds = array<i64: 1, 128>}, {transform_indices = @transform_5, window_bounds = array<i64: 16, 128>}]} {
    %c0 = arith.constant 0 : index
    %c0_0 = arith.constant 0 : index
    %0 = vector.load %arg2[%c0, %c0_0] : memref<16x128xbf16, #tpu.memory_space<vmem>>, vector<16x128xbf16>
    %c0_1 = arith.constant 0 : index
    %c0_2 = arith.constant 0 : index
    %1 = vector.load %arg4[%c0_1, %c0_2] : memref<128x128xbf16, #tpu.memory_space<vmem>>, vector<128x128xbf16>
    %cst = arith.constant dense<0.000000e+00> : vector<16x128xf32>
    %2 = tpu.matmul %0, %1, %cst {dimension_numbers = #tpu.dot_dimension_numbers<[1], [0], [0], [1], [0, 0, 1, 1], [], []>} : vector<16x128xbf16>, vector<128x128xbf16>, vector<16x128xf32> -> vector<16x128xf32>
    %c0_3 = arith.constant 0 : index
    %c0_4 = arith.constant 0 : index
    %3 = vector.load %arg3[%c0_3, %c0_4] : memref<16x16xbf16, #tpu.memory_space<vmem>>, vector<16x16xbf16>
    %c0_5 = arith.constant 0 : index
    %c0_6 = arith.constant 0 : index
    %4 = vector.load %arg5[%c0_5, %c0_6] : memref<16x128xbf16, #tpu.memory_space<vmem>>, vector<16x128xbf16>
    %cst_7 = arith.constant dense<0.000000e+00> : vector<16x128xf32>
    %5 = tpu.matmul %3, %4, %cst_7 {dimension_numbers = #tpu.dot_dimension_numbers<[1], [0], [0], [1], [0, 0, 1, 1], [], []>} : vector<16x16xbf16>, vector<16x128xbf16>, vector<16x128xf32> -> vector<16x128xf32>
    %c0_8 = arith.constant 0 : index
    %c0_9 = arith.constant 0 : index
    %6 = vector.load %arg6[%c0_8, %c0_9] : memref<1x128xf32, #tpu.memory_space<vmem>>, vector<1x128xf32>
    %7 = vector.broadcast %6 : vector<1x128xf32> to vector<16x128xf32>
    %8 = arith.addf %2, %7 : vector<16x128xf32>
    %cst_10 = arith.constant 5.000000e-01 : f32
    %9 = vector.broadcast %cst_10 : f32 to vector<16x128xf32>
    %10 = arith.mulf %9, %8 : vector<16x128xf32>
    %cst_11 = arith.constant 0.707106769 : f32
    %11 = vector.broadcast %cst_11 : f32 to vector<16x128xf32>
    %12 = arith.mulf %8, %11 : vector<16x128xf32>
    %13 = math.erf %12 : vector<16x128xf32>
    %cst_12 = arith.constant 1.000000e+00 : f32
    %14 = vector.broadcast %cst_12 : f32 to vector<16x128xf32>
    %15 = arith.addf %14, %13 : vector<16x128xf32>
    %16 = arith.mulf %10, %15 : vector<16x128xf32>
    %17 = arith.addf %16, %5 : vector<16x128xf32>
    %c0_13 = arith.constant 0 : index
    %c0_14 = arith.constant 0 : index
    %18 = vector.load %arg7[%c0_13, %c0_14] : memref<16x128xf32, #tpu.memory_space<vmem>>, vector<16x128xf32>
    tpu.vector_store %arg7[%c0_13, %c0_14], %17 {strides = array<i32>} : memref<16x128xf32, #tpu.memory_space<vmem>>, vector<16x128xf32>,
    return
  }
  func.func @transform_0(%arg0: i32, %arg1: i32) -> (i32, i32) {
    %c0_i32 = arith.constant 0 : i32
    %c0_i32_0 = arith.constant 0 : i32
    return %arg0, %c0_i32 : i32, i32
  }
  func.func @transform_1(%arg0: i32, %arg1: i32) -> (i32, i32) {
    %c0_i32 = arith.constant 0 : i32
    %c0_i32_0 = arith.constant 0 : i32
    return %arg0, %c0_i32 : i32, i32
  }
  func.func @transform_2(%arg0: i32, %arg1: i32) -> (i32, i32) {
    %c0_i32 = arith.constant 0 : i32
    %c0_i32_0 = arith.constant 0 : i32
    return %c0_i32, %arg1 : i32, i32
  }
  func.func @transform_3(%arg0: i32, %arg1: i32) -> (i32, i32) {
    %c0_i32 = arith.constant 0 : i32
    %c0_i32_0 = arith.constant 0 : i32
    return %c0_i32, %arg1 : i32, i32
  }
  func.func @transform_4(%arg0: i32, %arg1: i32) -> (i32, i32) {
    %c0_i32 = arith.constant 0 : i32
    %c0_i32_0 = arith.constant 0 : i32
    return %c0_i32, %arg1 : i32, i32
  }
  func.func @transform_5(%arg0: i32, %arg1: i32) -> (i32, i32) {
    %c0_i32 = arith.constant 0 : i32
    return %arg0, %arg1 : i32, i32
  }
}

</mosaic_0001>

<bundles_post_ra>
// kernel: constrained_rnn_cell.1
= control target key start
LH: loop header
LB: loop body
LE: loop exit
PB: predicated region body
PF: predicated region fallthrough
CT: control target
= control target key end

     0   :  { %vm54_vm0 = vcmask 130048   ;;  %s388_s2 = inlined_call_operand.vmem [shape: bf16[128,128], index: 2, kind: input, shape index: {}]   ;;  %s389_s3 = inlined_call_operand.vmem [shape: bf16[16,128], index: 3, kind: input, shape index: {}]   ;;  %s390_s1 = inlined_call_operand.vmem [shape: bf16[16,16], index: 1, kind: input, shape index: {}]   ;;  %s391_s4 = inlined_call_operand.vmem [shape: f32[1,128], index: 4, kind: input, shape index: {}]   ;;  %s392_s0 = inlined_call_operand.vmem [shape: bf16[16,128], index: 0, kind: input, shape index: {}]   ;;  %s393_s5 = inlined_call_operand.vmem [shape: f32[16,128], index: 5, kind: output, shape index: {}]  }
   0x1   :  { %v295_v0 = vld [vmem:[%s388_s2 + $0x38] sm:$0xff]  ;;  %v294_v1 = vld [vmem:[%s388_s2 + $0x30] sm:$0xff]  ;;  %v297_v2 = vld [vmem:[%s389_s3] sm:$0xff] }
   0x2   :  { %130 = vmatpush.bf16.msra.mxu1 %v295_v0  ;;  %v296_v3 = vld [vmem:[%s390_s1] sm:$0xff]  ;;  %65 = vmatpush.bf16.msra.mxu0 %v297_v2  ;;  %v293_v4 = vld [vmem:[%s388_s2 + $0x28] sm:$0xff]  ;;  %v291_v6 = vld [vmem:[%s388_s2 + $0x18] sm:$0xff] }
   0x3   :  { %v292_v5 = vld [vmem:[%s388_s2 + $0x20] sm:$0xff]  ;;  %v290_v7 = vld [vmem:[%s388_s2 + $0x10] sm:$0xff]  ;;  %v289_v8 = vld [vmem:[%s388_s2 + $0x8] sm:$0xff] }
   0x4   :  { %v288_v9 = vld [vmem:[%s388_s2] sm:$0xff] }
   0x5   :  { %248 = vmatmul.msk.bf16.vlgmr.msra.gmra.mxu0 %vm54_vm0, %v296_v3  ;;  %v287_v10 = vld [vmem:[%s392_s0] sm:$0xff] }
   0x6   :  { %131 = vmatpush.bf16.msra.mxu1 %v294_v1  ;;  %v298_v11 = vld [vmem:[%s391_s4] ss:$0 sm:$0xff] }
   0xa   :  { %132 = vmatpush.bf16.msra.mxu1 %v293_v4 }
   0xe   :  { %133 = vmatpush.bf16.msra.mxu1 %v292_v5 }
  0x12   :  { %134 = vmatpush.bf16.msra.mxu1 %v291_v6 }
  0x16   :  { %135 = vmatpush.bf16.msra.mxu1 %v290_v7 }
  0x1a   :  { %136 = vmatpush.bf16.msra.mxu1 %v289_v8 }
  0x1e   :  { %137 = vmatpush.bf16.msra.mxu1 %v288_v9 }
  0x21   :  { %138 = vmatmul.bf16.vlgmr.msra.gmra.mxu1 %v287_v10 }
  0x9e   :  { %v139_v12 = vpop.f32.mrf.mxu1 }
  0x9f   :  { %v369_v13 = vadd.f32 %v298_v11, %v139_v12 }
  0xa1   :  { %v146_v14 = vmul.f32 0.70710677, %v369_v13 }
  0xa3   :  { %v148_v15 = vmul.f32 %v146_v14, %v146_v14 }
  0xa5   :  { %v149_v16 = vmin.f32 %v148_v15, 16.0 }
  0xa6   :  { %v141_v17 = vpop.f32.mrf.mxu1 }
  0xa7   :  { %v150_v18 = vmul.f32 2.1237322e-06, %v149_v16  ;;  %v372_v19 = vadd.f32 %v298_v11, %v141_v17  ;;  %v161_v20 = vmul.f32 3.8918573e-05, %v149_v16 }
  0xa9   :  { %v151_v21 = vadd.f32 0.00028619796, %v150_v18  ;;  %v375_v22 = vmul.f32 0.70710677, %v372_v19  ;;  %v162_v23 = vadd.f32 0.001143296, %v161_v20 }
  0xab   :  { %v152_v24 = vmul.f32 %v151_v21, %v149_v16  ;;  %v188_v25 = vmul.f32 %v375_v22, %v375_v22  ;;  %v163_v26 = vmul.f32 %v162_v23, %v149_v16  ;;  %v144_v21 = vmul.f32 0.5, %v369_v13  ;;  %v67_v23 = vpop.f32.mrf.mxu0 }
  0xad   :  { %v189_v27 = vmin.f32 %v188_v25, 16.0  ;;  %v164_v28 = vadd.f32 0.014752088, %v163_v26  ;;  %v153_v29 = vadd.f32 0.0036580483, %v152_v24 }
  0xaf   :  { %v190_v30 = vmul.f32 2.1237322e-06, %v189_v27  ;;  %v201_v31 = vmul.f32 3.8918573e-05, %v189_v27  ;;  %v165_v32 = vmul.f32 %v164_v28, %v149_v16  ;;  %v154_v36 = vmul.f32 %v153_v29, %v149_v16 }
  0xb1   :  { %v191_v33 = vadd.f32 0.00028619796, %v190_v30  ;;  %v202_v34 = vadd.f32 0.001143296, %v201_v31  ;;  %v166_v35 = vadd.f32 0.112945676, %v165_v32 }
  0xb2   :  { %v155_v43 = vadd.f32 0.05243302, %v154_v36  ;;  %v145_v32 = vmul.f32 0.5, %v372_v19 }
  0xb3   :  { %v192_v37 = vmul.f32 %v191_v33, %v189_v27  ;;  %v203_v38 = vmul.f32 %v202_v34, %v189_v27  ;;  %v167_v39 = vmul.f32 %v166_v35, %v149_v16  ;;  %v69_v34 = vpop.f32.mrf.mxu0 }
  0xb4   :  { %v156_v49 = vmul.f32 %v155_v43, %v149_v16 }
  0xb5   :  { %v204_v40 = vadd.f32 0.014752088, %v203_v38  ;;  %v193_v41 = vadd.f32 0.0036580483, %v192_v37  ;;  %v168_v42 = vadd.f32 0.4994258, %v167_v39 }
  0xb6   :  { %v157_v53 = vadd.f32 0.18741608, %v156_v49 }
  0xb7   :  { %v205_v44 = vmul.f32 %v204_v40, %v189_v27  ;;  %v169_v45 = vmul.f32 %v168_v42, %v149_v16  ;;  %v194_v47 = vmul.f32 %v193_v41, %v189_v27 }
  0xb8   :  { %v158_v58 = vmul.f32 %v157_v53, %v149_v16 }
  0xb9   :  { %v206_v46 = vadd.f32 0.112945676, %v205_v44  ;;  %v170_v48 = vadd.f32 1.0, %v169_v45  ;;  %v195_v52 = vadd.f32 0.05243302, %v194_v47 }
  0xba   :  { %v159_v63 = vadd.f32 1.1283791, %v158_v58 }
  0xbb   :  { %v207_v50 = vmul.f32 %v206_v46, %v189_v27  ;;  %299 = vrcp.f32 %v170_v48  ;;  %v196_v57 = vmul.f32 %v195_v52, %v189_v27  ;;  %v182_v62 = vand.u32 2147483648, %v170_v48 }
  0xbc   :  { %v180_v1 = vand.u32 2147483647, %v170_v48  ;;  %vm176_vm2 = vweird.f32 %v170_v48  ;;  %v160_v7 = vmul.f32 %v159_v63, %v146_v14 }
  0xbd   :  { %v208_v51 = vadd.f32 0.4994258, %v207_v50  ;;  %v197_v61 = vadd.f32 0.18741608, %v196_v57  ;;  %v183_v5 = vor.u32 1.1754944e-38, %v182_v62 }
  0xbe   :  { %vm181_vm4 = vcmp.eq.f32.partialorder %v180_v1, 8.507059e+37 }
  0xbf   :  { %v209_v54 = vmul.f32 %v208_v51, %v189_v27  ;;  %v198_v4 = vmul.f32 %v197_v61, %v189_v27 }
  0xc1   :  { %v210_v55 = vadd.f32 1.0, %v209_v54  ;;  %v300_v56 = vpop.eup %299  ;;  %v199_v15 = vadd.f32 1.1283791, %v198_v4 }
  0xc2   :  { %v172_v59 = vmul.f32 %v300_v56, %v170_v48  ;;  %vm177_vm1 = vweird.f32 %v300_v56 }
  0xc3   :  { %301 = vrcp.f32 %v210_v55  ;;  %vm178_vm3 = vmor %vm176_vm2, %vm177_vm1  ;;  %v222_v12 = vand.u32 2147483648, %v210_v55  ;;  %v220_v17 = vand.u32 2147483647, %v210_v55  ;;  %vm216_vm6 = vweird.f32 %v210_v55 }
  0xc4   :  { %v173_v60 = vsub.f32 1.0, %v172_v59  ;;  %v200_v14 = vmul.f32 %v199_v15, %v375_v22 }
  0xc5   :  { %v223_v25 = vor.u32 1.1754944e-38, %v222_v12  ;;  %vm221_vm8 = vcmp.eq.f32.partialorder %v220_v17, 8.507059e+37 }
  0xc6   :  { %v174_v0 = vmul.f32 %v300_v56, %v173_v60 }
  0xc8   :  { %v175_v3 = vadd.f32 %v300_v56, %v174_v0 }
  0xc9   :  { %v302_v2 = vpop.eup %301 }
  0xca   :  { %v212_v6 = vmul.f32 %v302_v2, %v210_v55  ;;  %v179_v8 = vsel %vm178_vm3, %v300_v56, %v175_v3  ;;  %vm217_vm5 = vweird.f32 %v302_v2 }
  0xcb   :  { %v184_v9 = vsel %vm181_vm4, %v183_v5, %v179_v8  ;;  %vm218_vm7 = vmor %vm216_vm6, %vm217_vm5 }
  0xcc   :  { %v213_v10 = vsub.f32 1.0, %v212_v6  ;;  %v185_v11 = vmul.f32 %v184_v9, %v160_v7 }
  0xce   :  { %v214_v16 = vmul.f32 %v302_v2, %v213_v10  ;;  %v285_v18 = vclamps-f32 %v185_v11, 1.0 }
  0xd0   :  { %v215_v20 = vadd.f32 %v302_v2, %v214_v16  ;;  %v228_v24 = vadd.f32 1.0, %v285_v18 }
  0xd2   :  { %v219_v26 = vsel %vm218_vm7, %v302_v2, %v215_v20  ;;  %v230_v27 = vmul.f32 %v228_v24, %v144_v21 }
  0xd3   :  { %v224_v28 = vsel %vm221_vm8, %v223_v25, %v219_v26 }
  0xd4   :  { %v225_v29 = vmul.f32 %v224_v28, %v200_v14  ;;  %v232_v30 = vadd.f32 %v230_v27, %v67_v23 }
  0xd6   :  { %v286_v31 = vclamps-f32 %v225_v29, 1.0  ;;  %234 = vst [vmem:[%s393_s5] sm:$0xff] %v232_v30 }
  0xd8   :  { %v229_v13 = vadd.f32 1.0, %v286_v31 }
  0xda   :  { %v231_v33 = vmul.f32 %v229_v13, %v145_v32 }
  0xdc   :  { %v233_v35 = vadd.f32 %v231_v33, %v69_v34 }
  0xde   :  { %235 = vst [vmem:[%s393_s5 + $0x8] sm:$0xff] %v233_v35 }

</bundles_post_ra>
